<compile_context>
chip_gen: v6e
topology: v6e:2x2x1
jax: 0.10.0
libtpu: 0.0.40
codegen_flags: <defaults>
</compile_context>

<pallas_src>
from functools import partial

import jax
import jax.numpy as jnp
from jax.experimental import pallas as pl
from jax.experimental.pallas import tpu as pltpu

_KIB = 1024
_MIB = 1024 * 1024


def _elementwise_kernel(func, x_ref, o_ref):
    # Whole-tile elementwise apply on the VPU; cast to the (possibly different)
    # output dtype determined by eval_shape.
    o_ref[...] = func(x_ref[...]).astype(o_ref.dtype)


def _sublane_pack(dtype):
    # Sub-32-bit dtypes pack along sublanes: f32 -> 8, bf16 -> 16, int8/fp8 -> 32.
    return max(8, 32 // max(1, jnp.dtype(dtype).itemsize))


def _tpu_info():
    try:
        return pltpu.get_tpu_info()
    except Exception:  # pragma: no cover - defensive
        return None


def _vmem_capacity_bytes(info):
    if info is not None:
        try:
            return int(info.vmem_capacity_bytes)
        except Exception:  # pragma: no cover - defensive
            pass
    return 64 * _MIB  # v7x per-TC floor: safe on every generation.


def _num_tensorcores(info, vmem_cap):
    if info is not None:
        for name in ("num_cores", "core_count", "tensorcore_count", "num_tensorcores"):
            v = getattr(info, name, None)
            if isinstance(v, int) and 1 <= v <= 8:
                return v
    # Heuristic: 64 MiB per-TC VMEM => v7x-class chip with 2 TensorCores.
    return 2 if vmem_cap <= 64 * _MIB else 1


def _pick_lane_width(size, pack, cap=32768):
    """Largest multiple-of-128 divisor of `size` (<= cap), preferring widths
    that still leave >= `pack` sublane rows.  None if size % 128 != 0."""
    if size % 128 != 0:
        return None
    cands = [k for k in range(128, min(size, cap) + 1, 128) if size % k == 0]
    if not cands:
        return None
    preferred = [k for k in cands if size // k >= pack]
    return max(preferred) if preferred else max(cands)


def _padded_lane_width(size, pack):
    """Power-of-two lane width for the pad-to-lane-dense path."""
    for lane in (4096, 2048, 1024, 512, 256):
        if pl.cdiv(size, lane) >= pack:
            return lane
    return 128


class PallasLambda:
    """JAX/Pallas analogue of the PyTorch `Lambda` module.

    __init__ binds the function (and any extra positional/keyword args) via
    functools.partial, exactly like the PyTorch module.  For single-tensor,
    shape-preserving pointwise functions the forward pass runs inside a Pallas
    TPU kernel; everything else falls back to calling the function directly.
    """

    def __init__(self, func, *inputs, elementwise=True, **kwargs):
        self.func = partial(func, *inputs, **kwargs)
        self.elementwise = elementwise

    def __call__(self, *inputs, **kwargs):
        return self.forward(*inputs, **kwargs)

    def forward(self, *inputs, **kwargs):
        if (not self.elementwise) or kwargs or len(inputs) != 1:
            # TODO(synk): non-elementwise / multi-input Lambdas are not lowered
            # to a per-tile Pallas kernel; they run as plain JAX.
            return self.func(*inputs, **kwargs)
        x = inputs[0]
        if not isinstance(x, jax.Array) or x.ndim == 0 or x.size == 0:
            return self.func(x)

        # Validate that func is shape-preserving and learn the output dtype
        # before committing to the Pallas pointwise path.
        try:
            out_aval = jax.eval_shape(self.func, jax.ShapeDtypeStruct(x.shape, x.dtype))
        except Exception:
            return self.func(x)
        if not hasattr(out_aval, "shape") or tuple(out_aval.shape) != tuple(x.shape):
            # Shape-changing func (reduction / transpose / pytree output): not pointwise.
            return self.func(x)
        out_dtype = jnp.dtype(out_aval.dtype)
        if out_dtype == jnp.bool_:
            # TODO(synk): bool-valued (i1) outputs are not lowered; plain JAX fallback.
            return self.func(x)
        # TODO(synk): axis-sensitive but shape-preserving funcs (e.g. softmax)
        # are not auto-detected; callers must pass elementwise=False for those.
        return self._pallas_elementwise(x, out_dtype)

    # --- Pallas paths ------------------------------------------------------

    def _single_block_call(self, x2, out_dtype):
        """One full-array block, grid=(1,): no per-step pipelining overhead."""
        lead, lane = x2.shape
        return pl.pallas_call(
            partial(_elementwise_kernel, self.func),
            out_shape=jax.ShapeDtypeStruct((lead, lane), out_dtype),
            grid_spec=pltpu.PrefetchScalarGridSpec(
                num_scalar_prefetch=0,
                grid=(1,),
                in_specs=[pl.BlockSpec((lead, lane), lambda i: (0, 0))],
                out_specs=pl.BlockSpec((lead, lane), lambda i: (0, 0)),
            ),
            compiler_params=pltpu.CompilerParams(
                dimension_semantics=("arbitrary",),
            ),
        )(x2)

    def _tiled_call(self, x2, out_dtype, *, pack, elem_bytes, target_block_bytes,
                    min_steps, vmem_cap, footprint_cap, in_bytes, out_bytes):
        lead, lane = x2.shape
        size = lead * lane

        # Byte-budgeted sublane tile at the FULL block budget (HBM-bound: bigger
        # blocks amortize the ~0.35 us per-step pipeline overhead), rounded to
        # the dtype sublane pack.
        tm = target_block_bytes // (lane * elem_bytes)
        tm = max(pack, (tm // pack) * pack)
        tm = min(tm, lead)
        # Keep >= 2 grid steps per TensorCore (>= 4 total on 2-TC chips) so the
        # "parallel" axis shards across cores and each core can double-buffer.
        if pl.cdiv(lead, tm) < min_steps and lead > pack:
            tm = max(pack, (pl.cdiv(lead, min_steps) // pack) * pack)
        grid = (pl.cdiv(lead, tm),)

        cost = pl.CostEstimate(
            flops=size, transcendentals=0,
            bytes_accessed=size * (in_bytes + out_bytes))

        # TODO(synk): if a v7x profile shows exposed DMA gaps, switch the input
        # spec to pipeline_mode=pl.Buffered(3) and re-budget VMEM (3*in + 2*out).
        return pl.pallas_call(
            partial(_elementwise_kernel, self.func),
            out_shape=jax.ShapeDtypeStruct((lead, lane), out_dtype),
            grid_spec=pltpu.PrefetchScalarGridSpec(
                num_scalar_prefetch=0,
                grid=grid,
                in_specs=[pl.BlockSpec((tm, lane), lambda i: (i, 0))],
                out_specs=pl.BlockSpec((tm, lane), lambda i: (i, 0)),
            ),
            compiler_params=pltpu.CompilerParams(
                dimension_semantics=("parallel",),
                vmem_limit_bytes=int(min(vmem_cap, footprint_cap + 8 * _MIB)),
            ),
            cost_estimate=cost,
        )(x2)

    def _pallas_elementwise(self, x, out_dtype):
        orig_shape = x.shape
        size = int(x.size)
        in_bytes = jnp.dtype(x.dtype).itemsize
        out_bytes = out_dtype.itemsize
        elem_bytes = max(in_bytes, out_bytes)
        pack = _sublane_pack(x.dtype)

        info = _tpu_info()
        vmem_cap = _vmem_capacity_bytes(info)
        num_cores = _num_tensorcores(info, vmem_cap)

        # VMEM budget: in + out, double-buffered => ~4x one block resident.
        # 128 MiB chips (v5e/v6e) get the full half-VMEM footprint (16 MiB
        # blocks); 64 MiB chips (v7x) keep the tighter budget (8 MiB blocks).
        if vmem_cap >= 128 * _MIB:
            footprint_cap = vmem_cap // 2
        else:
            footprint_cap = min(vmem_cap // 2, 48 * _MIB)
        block_bytes_max = footprint_cap // 4
        target_block_bytes = block_bytes_max  # no artificial clamp: pure mem-bound.

        # Keep both TensorCores busy on 2-TC chips.
        single_block_max = (2 * _MIB) if num_cores == 1 else (512 * _KIB)
        single_block_max = min(single_block_max, block_bytes_max)
        min_steps = 2 * num_cores

        lane = _pick_lane_width(size, pack)
        pad_to = size
        if lane is None:
            # Flattened size not a multiple of 128: pad to a lane-dense slab so
            # stores stay unmasked full-width vst, then slice the pad back off.
            lane = _padded_lane_width(size, pack)
            pad_to = pl.cdiv(size, lane) * lane

        xf = x.reshape(-1)
        if pad_to != size:
            xf = jnp.pad(xf, (0, pad_to - size))
        lead = pad_to // lane
        x2 = xf.reshape(lead, lane)

        total_bytes = pad_to * elem_bytes
        if total_bytes <= single_block_max or lead <= pack:
            out2 = self._single_block_call(x2, out_dtype)
        else:
            out2 = self._tiled_call(
                x2, out_dtype, pack=pack, elem_bytes=elem_bytes,
                target_block_bytes=target_block_bytes, min_steps=min_steps,
                vmem_cap=vmem_cap, footprint_cap=footprint_cap,
                in_bytes=in_bytes, out_bytes=out_bytes)

        out = out2
        if pad_to != size:
            out = out.reshape(-1)[:size]
        return out.reshape(orig_shape)


if __name__ == "__main__":
    key = jax.random.PRNGKey(0)

    # Lambda(F.relu) equivalent on a small NCHW activation (the module spec).
    x = jax.random.normal(key, (2, 4, 16, 16), dtype=jnp.float32)
    relu_lambda = PallasLambda(jax.nn.relu)
    y = jax.block_until_ready(relu_lambda(x))
    ref = jax.nn.relu(x)
    assert y.shape == x.shape and y.dtype == x.dtype
    assert jnp.allclose(y, ref), "mismatch vs reference relu (small path)"

    # Byte-budgeted multi-block (tiled, lane-dense) path on a medium tensor.
    x_big = jax.random.normal(jax.random.PRNGKey(1), (8, 16, 128, 128), jnp.float32)
    y_big = jax.block_until_ready(relu_lambda(x_big))
    assert jnp.allclose(y_big, jax.nn.relu(x_big)), "mismatch (tiled path)"

    # Non-128-aligned size: pad-to-lane-dense Pallas path (7x7 feature map),
    # with a kwargs-bound Lambda (leaky_relu negative_slope) like the PyTorch
    # partial binding.
    x_odd = jax.random.normal(jax.random.PRNGKey(2), (2, 3, 7, 7), jnp.float32)
    leaky = PallasLambda(jax.nn.leaky_relu, negative_slope=0.1)
    y_odd = jax.block_until_ready(leaky(x_odd))
    assert jnp.allclose(y_odd, jax.nn.leaky_relu(x_odd, negative_slope=0.1))

    # Dtype-changing pointwise Lambda: output dtype taken from eval_shape.
    to_bf16 = PallasLambda(lambda t: (t * 2.0).astype(jnp.bfloat16))
    y_bf16 = jax.block_until_ready(to_bf16(x))
    assert y_bf16.dtype == jnp.bfloat16
    assert jnp.allclose(y_bf16.astype(jnp.float32),
                        (x * 2.0).astype(jnp.bfloat16).astype(jnp.float32))

    # Shape-changing Lambda (reduction): auto-detected via eval_shape, plain-JAX fallback.
    sum_lambda = PallasLambda(jnp.sum)
    s = jax.block_until_ready(sum_lambda(x))
    assert jnp.allclose(s, jnp.sum(x))

    print("KERNEL_OK")
</pallas_src>

<mosaic_0001>
module attributes {stable_mosaic.version = 11 : i64} {
  func.func @_elementwise_kernel(%arg0: i32, %arg1: memref<8x256xf32, #tpu.memory_space<vmem>>, %arg2: memref<8x256xf32, #tpu.memory_space<vmem>>) attributes {dimension_semantics = [#tpu.dimension_semantics<arbitrary>], iteration_bounds = array<i64: 1>, scalar_prefetch = 0 : i64, scratch_operands = 0 : i64, tpu.core_type = #tpu.core_type<tc>, window_params = [{pipeline_mode = #tpu.pipeline_mode<synchronous>, transform_indices = @transform_0, window_bounds = array<i64: 8, 256>}, {pipeline_mode = #tpu.pipeline_mode<synchronous>, transform_indices = @transform_1, window_bounds = array<i64: 8, 256>}]} {
    %c0 = arith.constant 0 : index
    %c0_0 = arith.constant 0 : index
    %0 = vector.load %arg1[%c0, %c0_0] : memref<8x256xf32, #tpu.memory_space<vmem>>, vector<8x256xf32>
    %cst = arith.constant 0.000000e+00 : f32
    %1 = vector.broadcast %cst : f32 to vector<8x256xf32>
    %2 = arith.maximumf %0, %1 : vector<8x256xf32>
    %c0_1 = arith.constant 0 : index
    %c0_2 = arith.constant 0 : index
    %3 = vector.load %arg2[%c0_1, %c0_2] : memref<8x256xf32, #tpu.memory_space<vmem>>, vector<8x256xf32>
    tpu.vector_store %arg2[%c0_1, %c0_2], %2 {strides = array<i32>} : memref<8x256xf32, #tpu.memory_space<vmem>>, vector<8x256xf32>,
    return
  }
  func.func @transform_0(%arg0: i32) -> (i32, i32) {
    %c0_i32 = arith.constant 0 : i32
    %c0_i32_0 = arith.constant 0 : i32
    %c0_i32_1 = arith.constant 0 : i32
    return %c0_i32, %c0_i32_0 : i32, i32
  }
  func.func @transform_1(%arg0: i32) -> (i32, i32) {
    %c0_i32 = arith.constant 0 : i32
    %c0_i32_0 = arith.constant 0 : i32
    %c0_i32_1 = arith.constant 0 : i32
    return %c0_i32, %c0_i32_0 : i32, i32
  }
}

</mosaic_0001>

<bundles_post_ra>
// kernel: tpu_custom_call.1
= control target key start
LH: loop header
LB: loop body
LE: loop exit
PB: predicated region body
PF: predicated region fallthrough
CT: control target
= control target key end

     0   :  { %6 = vsyncpa [#allocation3], 0  ;;  %s106_s0 = inlined_call_operand.hbm [shape: f32[8,256], index: 0, kind: input, shape index: {}]   ;;  %s107_s1 = inlined_call_operand.hbm [shape: f32[8,256], index: 1, kind: output, shape index: {}]  }
   0x1   :  { %7 = vsyncpa [#allocation4], 0  ;;  %s88_s6 = smov [#allocation2]  }
   0x2   :  { %s14_s7 = sshll.u32 %s88_s6, 4  ;;  %s15_s7 = int_to_ptr.vmem [resolvable:$true] %s14_s7 }
   0x3   :  { %s52_s8 = scalar_lea.vmem %s15_s7, 256  ;;  %p57_p1 = scmp.lt.s32.totalorder %s15_s7, %s15_s7 }
   0x4   :  { %p53_p0 = scmp.ne.s32.totalorder %s15_s7, %s52_s8  ;;  %p58_p2 = scmp.lt.s32.totalorder %s52_s8, %s52_s8 }
   0x6   :  { %p59_p3 = por %p58_p2, %p57_p1 }
   0x8   :  { %p60_p4 = pnand %p59_p3, %p53_p0 }
   0xa   :  { %63 = shalt.err (!%p60_p4)
}
   0xb   :  { %17 = dma.hbm_to_vmem [thread:$0]  %s106_s0, 256, %s15_s7, [#allocation3]  }
   0xc   :  { %84 = dma.done.wait [#allocation3], 256  }
   0xd   :  { %85 = vsyncadd [#allocation3], 4294967040  ;;  %s89_s11 = smov [#allocation5]   ;;  %v21_v0 = vld [vmem:[#allocation2] sm:$0xff]  ;;  %v22_v1 = vld [vmem:[#allocation2 + $0x8] sm:$0xff] }
   0xe   :  { %s33_s12 = sshll.u32 %s89_s11, 4  ;;  %v23_v2 = vmax.f32 %v21_v0, 0.0  ;;  %v24_v3 = vmax.f32 %v22_v1, 0.0  ;;  %s34_s12 = int_to_ptr.vmem [resolvable:$true] %s33_s12 }
   0xf   :  { %s64_s13 = scalar_lea.vmem %s34_s12, 256  ;;  %p69_p6 = scmp.lt.s32.totalorder %s34_s12, %s34_s12 }
  0x10   :  { %25 = vst [vmem:[#allocation5] sm:$0xff] %v23_v2  ;;  %26 = vst [vmem:[#allocation5 + $0x8] sm:$0xff] %v24_v3  ;;  %p65_p5 = scmp.ne.s32.totalorder %s34_s12, %s64_s13  ;;  %p70_p7 = scmp.lt.s32.totalorder %s64_s13, %s64_s13 }
  0x12   :  { %p71_p8 = por %p70_p7, %p69_p6 }
  0x14   :  { %p72_p9 = pnand %p71_p8, %p65_p5 }
  0x16   :  { %75 = shalt.err (!%p72_p9)
}
  0x17   :  { %36 = dma.vmem_to_hbm [thread:$0]  %s34_s12, 256, %s107_s1, [#allocation4]  }
  0x18   :  { %86 = dma.done.wait [#allocation4], 256  }
  0x19   :  { %87 = vsyncadd [#allocation4], 4294967040 }
  0x1a   :  { %40 = vsyncpa [#allocation3], 1 }
  0x1b   :  { %41 = vsyncpa [#allocation4], 1 }

</bundles_post_ra>
